<compile_context>
chip_gen: v6e
topology: v6e:2x2x1
jax: 0.10.0
libtpu: 0.0.40
codegen_flags: <defaults>
</compile_context>

<pallas_src>
import functools

import jax
import jax.numpy as jnp
from jax import lax
from jax.experimental import pallas as pl
from jax.experimental.pallas import tpu as pltpu


# ----------------------------------------------------------------------------
# Kernel: R lane-aligned row-slab copies into a VMEM operand + one MXU matmul.
# ----------------------------------------------------------------------------
def _fused_conv_kernel(H, R, D, BT, x_ref, w_ref, b_ref, o_ref, col_ref):
    # x_ref  : (BT, H + R - 1, D)  padded input rows, lanes = Wp*Cin   (bf16)
    # w_ref  : (R*D, W*Ct)         banded weights (all taps, all convs) (bf16)
    # b_ref  : (1, W*Ct)           bias per output lane                 (f32)
    # o_ref  : (BT*H, W*Ct)        lane-dense output slab
    # col_ref: VMEM (BT*H, R*D)    matmul operand ("im2col" over padded rows)
    for r in range(R):  # R is small and static (3 or 5) -> fully unrolled
        # Row-slab for vertical offset r; minor dim untouched, store is a
        # full-width, 128-aligned (D = Wp*Cin is a multiple of 128) dense vst.
        col_ref[:, r * D:(r + 1) * D] = x_ref[:, r:r + H, :].reshape(BT * H, D)
    acc = jnp.dot(col_ref[...], w_ref[...], preferred_element_type=jnp.float32)
    o_ref[...] = (acc + b_ref[...]).astype(o_ref.dtype)


# ----------------------------------------------------------------------------
# Wrapper: pad once, build the banded weight + bias row, single pallas_call.
# ----------------------------------------------------------------------------
def conv2d_fused_nhwc(x, convs, *, compute_dtype=jnp.bfloat16):
    """Fused same-padding, stride-1 2D convolutions in NHWC.

    `convs` is a list of (w_oihw, bias, dilation); all share the input and
    their outputs are concatenated along the channel axis (in list order).
    """
    B, H, W, Cin = x.shape
    K = int(convs[0][0].shape[2])
    for w_oihw, _, _ in convs:
        assert w_oihw.shape[1] == Cin and w_oihw.shape[2] == w_oihw.shape[3] == K
    couts = [int(w.shape[0]) for w, _, _ in convs]
    Ct = sum(couts)
    max_dil = max(int(d) for _, _, d in convs)
    pad = (K // 2) * max_dil
    Hp, Wp = H + 2 * pad, W + 2 * pad
    R = (K - 1) * max_dil + 1          # vertical tap span in the padded buffer
    D = Wp * Cin                       # lanes of one padded input row

    # --- pad once, fold (w, c) into the lane axis, cast to bf16 --------------
    xpad = jnp.pad(x, ((0, 0), (pad, pad), (pad, pad), (0, 0)))
    xpad = xpad.reshape(B, Hp, D).astype(compute_dtype)

    # --- banded weight (R*Wp*Cin, W*Ct) and bias row (1, W*Ct) ---------------
    # T[r, wp, c, w, cc] = W_conv[kh, kw, c, co] iff r = off + kh*d and
    # wp = w + off + kw*d, with off = pad - (K//2)*d; columns of different
    # convs occupy disjoint cc ranges (channel-concat order).
    T = jnp.zeros((R, Wp, Cin, W, Ct), jnp.float32)
    col = 0
    biases = []
    for w_oihw, bias, d in convs:
        d = int(d)
        Cout = int(w_oihw.shape[0])
        off = pad - (K // 2) * d
        w_hwio = jnp.transpose(w_oihw, (2, 3, 1, 0)).astype(jnp.float32)
        for kh in range(K):
            r = off + kh * d
            for kw in range(K):
                shift = off + kw * d
                band = jnp.eye(Wp, W, k=-shift, dtype=jnp.float32)  # [w+shift, w]=1
                T = T.at[r, :, :, :, col:col + Cout].add(
                    jnp.einsum("pw,co->pcwo", band, w_hwio[kh, kw]))
        biases.append(bias.astype(jnp.float32))
        col += Cout
    T = T.reshape(R * D, W * Ct).astype(compute_dtype)
    bias_row = jnp.tile(jnp.concatenate(biases), (W,)).reshape(1, W * Ct)

    # --- batch tiling: >=2 "parallel" grid steps when B allows (v7x 2 TCs) ---
    BT = B // 2 if (B % 2 == 0 and B >= 2) else B
    per_item_bytes = (Hp * D + H * R * D) * jnp.dtype(compute_dtype).itemsize
    while BT > 1 and (B % BT != 0 or BT * per_item_bytes > 8 * 1024 * 1024):
        BT -= 1

    kernel = functools.partial(_fused_conv_kernel, H, R, D, BT)
    out2d = pl.pallas_call(
        kernel,
        out_shape=jax.ShapeDtypeStruct((B * H, W * Ct), x.dtype),
        grid_spec=pltpu.PrefetchScalarGridSpec(
            num_scalar_prefetch=0,
            grid=(B // BT,),
            in_specs=[
                pl.BlockSpec((BT, Hp, D), lambda i: (i, 0, 0)),
                pl.BlockSpec((R * D, W * Ct), lambda i: (0, 0)),
                pl.BlockSpec((1, W * Ct), lambda i: (0, 0)),
            ],
            out_specs=pl.BlockSpec((BT * H, W * Ct), lambda i: (i, 0)),
            scratch_shapes=[pltpu.VMEM((BT * H, R * D), compute_dtype)],
        ),
        compiler_params=pltpu.CompilerParams(
            dimension_semantics=("parallel",),
            vmem_limit_bytes=32 * 1024 * 1024,
        ),
    )(xpad, T, bias_row)
    return out2d.reshape(B, H, W, Ct)


# ----------------------------------------------------------------------------
# Module-level glue: config, deterministic parameter init, forward pass.
# ----------------------------------------------------------------------------
class Config:
    def __init__(self, hidden_dim=32, cnn_model="hybrid", cnn_kernel_size=3,
                 cnn_skip=False):
        self.hidden_dim = hidden_dim
        self.cnn_model = cnn_model
        self.cnn_kernel_size = cnn_kernel_size
        self.cnn_skip = cnn_skip


def init_conv2d_layer_params(key, config, emb_dim=None, first_layer=True):
    emb_dim = config.hidden_dim if emb_dim is None else emb_dim
    skip = (first_layer is False) and (config.cnn_skip is True)
    in_dim = emb_dim * 2 if skip else emb_dim
    out_dim = emb_dim // 2 if config.cnn_model == "hybrid" else emb_dim
    K = config.cnn_kernel_size

    def init_conv(k):
        kw, kb = jax.random.split(k)
        fan_in = in_dim * K * K
        bound = 1.0 / jnp.sqrt(fan_in)
        w = jax.random.uniform(kw, (out_dim, in_dim, K, K), jnp.float32,
                               -bound, bound)            # OIHW (PyTorch layout)
        b = jax.random.uniform(kb, (out_dim,), jnp.float32, -bound, bound)
        return w, b

    k1, k2 = jax.random.split(key)
    w1, b1 = init_conv(k1)
    w2, b2 = init_conv(k2)
    return {"w1": w1, "b1": b1, "w2": w2, "b2": b2, "skip": skip}


def conv2d_layer_forward(params, config, x, states, masks):
    # x: (B, H, W, emb_dim) channels-last, states: optional (B, H, W, emb_dim),
    # masks: (B, H, W)
    x_in = x
    if states is not None and params["skip"]:
        x = jnp.concatenate([x, states], axis=-1)
    if config.cnn_model == "plain":
        convs = [(params["w1"], params["b1"], 1)]
    elif config.cnn_model == "dilation":
        convs = [(params["w2"], params["b2"], 2)]
    elif config.cnn_model == "hybrid":
        convs = [(params["w1"], params["b1"], 1),
                 (params["w2"], params["b2"], 2)]
    else:
        raise ValueError(config.cnn_model)
    out_x = conv2d_fused_nhwc(x, convs)
    # `out_x.mul(masks.unsqueeze(-1))` in PyTorch is non-in-place -> no effect.
    del masks
    return out_x, x_in


# ----------------------------------------------------------------------------
# Pure-JAX references (for correctness check of the Pallas conv).
# ----------------------------------------------------------------------------
def _ref_conv(x, w_oihw, bias, dilation):
    pad = (w_oihw.shape[2] // 2) * dilation
    out = lax.conv_general_dilated(
        x, jnp.transpose(w_oihw, (2, 3, 1, 0)),
        window_strides=(1, 1), padding=[(pad, pad), (pad, pad)],
        rhs_dilation=(dilation, dilation),
        dimension_numbers=("NHWC", "HWIO", "NHWC"))
    return out + bias


def _ref_conv_bf16(x, w_oihw, bias, dilation):
    # Same bf16-operand / f32-accumulation numerics as the kernel.
    pad = (w_oihw.shape[2] // 2) * dilation
    out = lax.conv_general_dilated(
        x.astype(jnp.bfloat16),
        jnp.transpose(w_oihw, (2, 3, 1, 0)).astype(jnp.bfloat16),
        window_strides=(1, 1), padding=[(pad, pad), (pad, pad)],
        rhs_dilation=(dilation, dilation),
        dimension_numbers=("NHWC", "HWIO", "NHWC"),
        preferred_element_type=jnp.float32)
    return out + bias


if __name__ == "__main__":
    key = jax.random.PRNGKey(0)
    config = Config(hidden_dim=32, cnn_model="hybrid", cnn_kernel_size=3,
                    cnn_skip=False)

    B, H, W = 2, 8, 8
    k_param, k_x, k_m = jax.random.split(key, 3)
    params = init_conv2d_layer_params(k_param, config, first_layer=True)

    x = jax.random.normal(k_x, (B, H, W, config.hidden_dim), jnp.float32)
    masks = (jax.random.uniform(k_m, (B, H, W)) > 0.1).astype(jnp.float32)

    out_x, x_in = conv2d_layer_forward(params, config, x, None, masks)
    out_x = jax.block_until_ready(out_x)

    # Sanity checks.
    ref_bf16 = jnp.concatenate(
        [_ref_conv_bf16(x, params["w1"], params["b1"], 1),
         _ref_conv_bf16(x, params["w2"], params["b2"], 2)], axis=-1)
    ref_f32 = jnp.concatenate(
        [_ref_conv(x, params["w1"], params["b1"], 1),
         _ref_conv(x, params["w2"], params["b2"], 2)], axis=-1)

    assert out_x.shape == (B, H, W, config.hidden_dim)
    # Tight check against a reference with identical bf16-operand numerics.
    assert jnp.allclose(out_x, ref_bf16, atol=5e-3, rtol=5e-3), \
        float(jnp.max(jnp.abs(out_x - ref_bf16)))
    # Loose check against the full-f32 reference (bf16 quantization only).
    assert jnp.allclose(out_x, ref_f32, atol=5e-2, rtol=5e-2), \
        float(jnp.max(jnp.abs(out_x - ref_f32)))
    assert jnp.array_equal(x_in, x)

    print("KERNEL_OK")
</pallas_src>

<mosaic_0001>
module attributes {stable_mosaic.version = 11 : i64} {
  func.func @_fused_conv_kernel(%arg0: i32, %arg1: memref<1x12x384xbf16, #tpu.memory_space<vmem>>, %arg2: memref<1920x256xbf16, #tpu.memory_space<vmem>>, %arg3: memref<1x256xf32, #tpu.memory_space<vmem>>, %arg4: memref<8x256xf32, #tpu.memory_space<vmem>>, %arg5: memref<8x1920xbf16, #tpu.memory_space<vmem>>) attributes {dimension_semantics = [#tpu.dimension_semantics<parallel>], iteration_bounds = array<i64: 2>, scalar_prefetch = 0 : i64, scratch_operands = 1 : i64, tpu.core_type = #tpu.core_type<tc>, window_params = [{transform_indices = @transform_0, window_bounds = array<i64: 1, 12, 384>}, {pipeline_mode = #tpu.pipeline_mode<synchronous>, transform_indices = @transform_1, window_bounds = array<i64: 1920, 256>}, {pipeline_mode = #tpu.pipeline_mode<synchronous>, transform_indices = @transform_2, window_bounds = array<i64: 1, 256>}, {transform_indices = @transform_3, window_bounds = array<i64: 8, 256>}]} {
    %c0 = arith.constant 0 : index
    %c0_0 = arith.constant 0 : index
    %c0_1 = arith.constant 0 : index
    %0 = vector.load %arg1[%c0, %c0_0, %c0_1] : memref<1x12x384xbf16, #tpu.memory_space<vmem>>, vector<1x8x384xbf16>
    %1 = vector.shape_cast %0 : vector<1x8x384xbf16> to vector<8x384xbf16>
    %c0_2 = arith.constant 0 : index
    %c0_3 = arith.constant 0 : index
    %2 = vector.load %arg5[%c0_2, %c0_3] : memref<8x1920xbf16, #tpu.memory_space<vmem>>, vector<8x384xbf16>
    tpu.vector_store %arg5[%c0_2, %c0_3], %1 {strides = array<i32>} : memref<8x1920xbf16, #tpu.memory_space<vmem>>, vector<8x384xbf16>,
    %c0_4 = arith.constant 0 : index
    %c1 = arith.constant 1 : index
    %c0_5 = arith.constant 0 : index
    %3 = vector.load %arg1[%c0_4, %c1, %c0_5] : memref<1x12x384xbf16, #tpu.memory_space<vmem>>, vector<1x8x384xbf16>
    %4 = vector.shape_cast %3 : vector<1x8x384xbf16> to vector<8x384xbf16>
    %c0_6 = arith.constant 0 : index
    %c384 = arith.constant 384 : index
    %5 = vector.load %arg5[%c0_6, %c384] : memref<8x1920xbf16, #tpu.memory_space<vmem>>, vector<8x384xbf16>
    tpu.vector_store %arg5[%c0_6, %c384], %4 {strides = array<i32>} : memref<8x1920xbf16, #tpu.memory_space<vmem>>, vector<8x384xbf16>,
    %c0_7 = arith.constant 0 : index
    %c2 = arith.constant 2 : index
    %c0_8 = arith.constant 0 : index
    %6 = vector.load %arg1[%c0_7, %c2, %c0_8] : memref<1x12x384xbf16, #tpu.memory_space<vmem>>, vector<1x8x384xbf16>
    %7 = vector.shape_cast %6 : vector<1x8x384xbf16> to vector<8x384xbf16>
    %c0_9 = arith.constant 0 : index
    %c768 = arith.constant 768 : index
    %8 = vector.load %arg5[%c0_9, %c768] : memref<8x1920xbf16, #tpu.memory_space<vmem>>, vector<8x384xbf16>
    tpu.vector_store %arg5[%c0_9, %c768], %7 {strides = array<i32>} : memref<8x1920xbf16, #tpu.memory_space<vmem>>, vector<8x384xbf16>,
    %c0_10 = arith.constant 0 : index
    %c3 = arith.constant 3 : index
    %c0_11 = arith.constant 0 : index
    %9 = vector.load %arg1[%c0_10, %c3, %c0_11] : memref<1x12x384xbf16, #tpu.memory_space<vmem>>, vector<1x8x384xbf16>
    %10 = vector.shape_cast %9 : vector<1x8x384xbf16> to vector<8x384xbf16>
    %c0_12 = arith.constant 0 : index
    %c1152 = arith.constant 1152 : index
    %11 = vector.load %arg5[%c0_12, %c1152] : memref<8x1920xbf16, #tpu.memory_space<vmem>>, vector<8x384xbf16>
    tpu.vector_store %arg5[%c0_12, %c1152], %10 {strides = array<i32>} : memref<8x1920xbf16, #tpu.memory_space<vmem>>, vector<8x384xbf16>,
    %c0_13 = arith.constant 0 : index
    %c4 = arith.constant 4 : index
    %c0_14 = arith.constant 0 : index
    %12 = vector.load %arg1[%c0_13, %c4, %c0_14] : memref<1x12x384xbf16, #tpu.memory_space<vmem>>, vector<1x8x384xbf16>
    %13 = vector.shape_cast %12 : vector<1x8x384xbf16> to vector<8x384xbf16>
    %c0_15 = arith.constant 0 : index
    %c1536 = arith.constant 1536 : index
    %14 = vector.load %arg5[%c0_15, %c1536] : memref<8x1920xbf16, #tpu.memory_space<vmem>>, vector<8x384xbf16>
    tpu.vector_store %arg5[%c0_15, %c1536], %13 {strides = array<i32>} : memref<8x1920xbf16, #tpu.memory_space<vmem>>, vector<8x384xbf16>,
    %c0_16 = arith.constant 0 : index
    %c0_17 = arith.constant 0 : index
    %15 = vector.load %arg5[%c0_16, %c0_17] : memref<8x1920xbf16, #tpu.memory_space<vmem>>, vector<8x1920xbf16>
    %c0_18 = arith.constant 0 : index
    %c0_19 = arith.constant 0 : index
    %16 = vector.load %arg2[%c0_18, %c0_19] : memref<1920x256xbf16, #tpu.memory_space<vmem>>, vector<1920x256xbf16>
    %cst = arith.constant dense<0.000000e+00> : vector<8x256xf32>
    %17 = tpu.matmul %15, %16, %cst {dimension_numbers = #tpu.dot_dimension_numbers<[1], [0], [0], [1], [0, 0, 1, 1], [], []>} : vector<8x1920xbf16>, vector<1920x256xbf16>, vector<8x256xf32> -> vector<8x256xf32>
    %c0_20 = arith.constant 0 : index
    %c0_21 = arith.constant 0 : index
    %18 = vector.load %arg3[%c0_20, %c0_21] : memref<1x256xf32, #tpu.memory_space<vmem>>, vector<1x256xf32>
    %19 = vector.broadcast %18 : vector<1x256xf32> to vector<8x256xf32>
    %20 = arith.addf %17, %19 : vector<8x256xf32>
    %c0_22 = arith.constant 0 : index
    %c0_23 = arith.constant 0 : index
    %21 = vector.load %arg4[%c0_22, %c0_23] : memref<8x256xf32, #tpu.memory_space<vmem>>, vector<8x256xf32>
    tpu.vector_store %arg4[%c0_22, %c0_23], %20 {strides = array<i32>} : memref<8x256xf32, #tpu.memory_space<vmem>>, vector<8x256xf32>,
    return
  }
  func.func @transform_0(%arg0: i32) -> (i32, i32, i32) {
    %c0_i32 = arith.constant 0 : i32
    %c0_i32_0 = arith.constant 0 : i32
    %c0_i32_1 = arith.constant 0 : i32
    return %arg0, %c0_i32, %c0_i32_0 : i32, i32, i32
  }
  func.func @transform_1(%arg0: i32) -> (i32, i32) {
    %c0_i32 = arith.constant 0 : i32
    %c0_i32_0 = arith.constant 0 : i32
    %c0_i32_1 = arith.constant 0 : i32
    return %c0_i32, %c0_i32_0 : i32, i32
  }
  func.func @transform_2(%arg0: i32) -> (i32, i32) {
    %c0_i32 = arith.constant 0 : i32
    %c0_i32_0 = arith.constant 0 : i32
    %c0_i32_1 = arith.constant 0 : i32
    return %c0_i32, %c0_i32_0 : i32, i32
  }
  func.func @transform_3(%arg0: i32) -> (i32, i32) {
    %c0_i32 = arith.constant 0 : i32
    %c0_i32_0 = arith.constant 0 : i32
    return %arg0, %c0_i32 : i32, i32
  }
}

</mosaic_0001>

<bundles_post_ra>
// kernel: tpu_custom_call.1
= control target key start
LH: loop header
LB: loop body
LE: loop exit
PB: predicated region body
PF: predicated region fallthrough
CT: control target
= control target key end

     0   :  { %8 = vsyncpa [#allocation4], 0  ;;  %s3268_s0 = inlined_call_operand.vmem [shape: bf16[2,12,384], index: 0, kind: input, shape index: {}]   ;;  %s3269_s1 = inlined_call_operand.hbm [shape: bf16[1920,256], index: 1, kind: input, shape index: {}]   ;;  %s3270_s2 = inlined_call_operand.vmem [shape: f32[1,256], index: 2, kind: input, shape index: {}]   ;;  %s3271_s3 = inlined_call_operand.hbm [shape: f32[16,256], index: 3, kind: output, shape index: {}]  }
   0x1   :  { %9 = vsyncpa [#allocation5], 0 }
   0x2   :  { %11 = vsyncpa [#allocation5 + $0x1], 0  ;;  %s3065_s12 = smov 0   ;;  %s3067_s13 = smov 0  }
   0x3   :  { %s3069_s14 = smov 0   ;;  %s3071_s15 = smov 0  }
   0x4 LB: > { %s3086_s16 = sadd.s32 4294967295, %s3038_s15   ;;  %s2250_s17 = sadd.s32 4294967294, %s3038_s15   ;;  %s3038_s15 = sphi %s3071_s15, %s3287_s15   ;;  %s3034_s14 = sphi %s3069_s14, %s3286_s14   ;;  %s3030_s13 = sphi %s3067_s13, %s3285_s13   ;;  %s3026_s12 = sphi %s3065_s12, %s3284_s12  }
   0x5   : > { %s3090_s18 = sadd.s32 1, %s3038_s15   ;;  %s92_s19 = sadd.s32 1, %s3034_s14 }
   0x6   : > { %s89_s20 = ssub.s32 %s3038_s15, %s3090_s18  ;;  %p102_p0 = scmp.ne.s32.totalorder %s3034_s14, %s3030_s13 }
   0x7   : > { %p90_p1 = scmp.eq.s32.totalorder %s89_s20, 0  ;;  %p103_p2 = scmp.eq.s32.totalorder %s3086_s16, 1 }
   0x8   : > { %p108_p3 = scmp.ne.s32.totalorder %s3030_s13, %s3026_s12  ;;  %p109_p4 = scmp.eq.s32.totalorder %s2250_s17, 1 }
   0x9   : > { %s3101_s21 = scalar_select %p90_p1, %s3034_s14, %s92_s19  }
   0xa   : > { %p3103_p5 = por %p103_p2, %p102_p0  ;;  %p3107_p6 = por %p109_p4, %p108_p3 }
   0xb   : > { %p2251_p7 = scmp.ge.s32.totalorder %s3038_s15, 1  ;;  %p116_p8 = scmp.lt.s32.totalorder %s3038_s15, 3 }
   0xc   : > { %s3273_s23 = scalar_select %p3107_p6, 1, 0 }
   0xd   : > { %p2538_p9 = scmp.eq.s32.totalorder %s3086_s16, 0  ;;  %p3114_p10 = pnand %p2251_p7, %p116_p8 }
   0xe   : > { %s3040_s25 = smov [#allocation3]  }
   0xf   : > { %s128_s26 = sshll.u32 %s3040_s25, 4  ;;  %p2530_p11 = pneg %p3114_p10  ;;  %s129_s26 = int_to_ptr.vmem [resolvable:$true] %s128_s26 }
  0x10   : > { %s2959_s27 = scalar_lea.vmem %s129_s26, 30720  ;;  %p2967_p3 = scmp.lt.s32.totalorder %s129_s26, %s129_s26 }
  0x11   : > { %p2531_p12 = pnand %p2538_p9, %p2530_p11  ;;  %p2960_p0 = scmp.ne.s32.totalorder %s129_s26, %s2959_s27 }
  0x12   : > { %p2968_p4 = scmp.lt.s32.totalorder %s2959_s27, %s2959_s27 }
  0x13   : > { %p2950_p13 = pneg %p2531_p12 }
  0x14   : > { %p2969_p6 = por %p2968_p4, %p2967_p3 }
  0x15   : > { %p2962_p1 = pnand %p2960_p0, %p2950_p13 }
  0x17   : > { %p2963_p2 = pneg %p2962_p1 }
  0x19   : > { %p2970_p7 = pnand %p2969_p6, %p2963_p2 }
  0x1b   : > { %2973 = shalt.err (!%p2970_p7)
}
  0x1c   : > { %s3041_s28 = smov 128   ;;  %s3042_s29 = smov 8  }
  0x1d   : > { %2533 = dma.hbm_to_vmem [thread:$0]  (!%p2531_p12), %s3269_s1, 30720, %s129_s26, [#allocation4], %s3041_s28, %s3041_s28, %s3042_s29  }
  0x1e   : > { %155 = sbr.rel (%p3114_p10) target bundleno = 505 (0x1f9), region = 32 }
  0x23   : > { %3017 = dma.done.wait (%p2538_p9), [#allocation4], 30720  }
  0x24   : > { %3019 = vsyncadd (%p2538_p9), [#allocation4], 4294936576  ;;  %v2577_v0 = vld [vmem:[#allocation3 + $0x74] ss:$8 sps:$4 sm:$0xff]   ;;  %v2579_v1 = vld [vmem:[#allocation3 + $0x70] ss:$8 sps:$4 sm:$0xff]  }
  0x25   : > { %1834 = vmatprep.subr.bf16.mxu0 %v2577_v0  ;;  %v2580_v2 = vld [vmem:[#allocation3 + $0x174] ss:$8 sps:$4 sm:$0xff]   ;;  %v2582_v3 = vld [vmem:[#allocation3 + $0x170] ss:$8 sps:$4 sm:$0xff]   ;;  %v2583_v4 = vld [vmem:[#allocation3 + $0x64] ss:$8 sps:$4 sm:$0xff]  }
  0x26   : > { %1835 = vmatpush1.bf16.msra.mxu0 %v2579_v1  ;;  %v2585_v5 = vld [vmem:[#allocation3 + $0x60] ss:$8 sps:$4 sm:$0xff]   ;;  %1875 = vmatprep.subr.bf16.mxu1 %v2580_v2  ;;  %v2586_v6 = vld [vmem:[#allocation3 + $0x164] ss:$8 sps:$4 sm:$0xff]   ;;  %v2589_v8 = vld [vmem:[#allocation3 + $0x54] ss:$8 sps:$4 sm:$0xff]  }
  0x27   : > { %1876 = vmatpush1.bf16.msra.mxu1 %v2582_v3  ;;  %1836 = vmatprep.subr.bf16.mxu0 %v2583_v4  ;;  %v2588_v7 = vld [vmem:[#allocation3 + $0x160] ss:$8 sps:$4 sm:$0xff]   ;;  %v2591_v9 = vld [vmem:[#allocation3 + $0x50] ss:$8 sps:$4 sm:$0xff]   ;;  %v2592_v10 = vld [vmem:[#allocation3 + $0x154] ss:$8 sps:$4 sm:$0xff]  }
  0x28   : > { %1877 = vmatprep.subr.bf16.mxu1 %v2586_v6  ;;  %v2595_v11 = vld [vmem:[#allocation3 + $0x44] ss:$8 sps:$4 sm:$0xff]   ;;  %v2594_v12 = vld [vmem:[#allocation3 + $0x150] ss:$8 sps:$4 sm:$0xff]   ;;  %v2597_v14 = vld [vmem:[#allocation3 + $0x40] ss:$8 sps:$4 sm:$0xff]  }
  0x29   : > { %v2598_v13 = vld [vmem:[#allocation3 + $0x144] ss:$8 sps:$4 sm:$0xff]   ;;  %v2601_v15 = vld [vmem:[#allocation3 + $0x34] ss:$8 sps:$4 sm:$0xff]   ;;  %v2600_v16 = vld [vmem:[#allocation3 + $0x140] ss:$8 sps:$4 sm:$0xff]  }
  0x2a   : > { %1837 = vmatpush1.bf16.msra.mxu0 %v2585_v5  ;;  %v2604_v17 = vld [vmem:[#allocation3 + $0x134] ss:$8 sps:$4 sm:$0xff]   ;;  %v2603_v18 = vld [vmem:[#allocation3 + $0x30] ss:$8 sps:$4 sm:$0xff]   ;;  %v2607_v19 = vld [vmem:[#allocation3 + $0x24] ss:$8 sps:$4 sm:$0xff]  }
  0x2b   : > { %1838 = vmatprep.subr.bf16.mxu0 %v2589_v8  ;;  %1878 = vmatpush1.bf16.msra.mxu1 %v2588_v7  ;;  %v2606_v20 = vld [vmem:[#allocation3 + $0x130] ss:$8 sps:$4 sm:$0xff]   ;;  %v2610_v21 = vld [vmem:[#allocation3 + $0x124] ss:$8 sps:$4 sm:$0xff]   ;;  %v2609_v22 = vld [vmem:[#allocation3 + $0x20] ss:$8 sps:$4 sm:$0xff]  }
  0x2c   : > { %1879 = vmatprep.subr.bf16.mxu1 %v2592_v10  ;;  %v2613_v23 = vld [vmem:[#allocation3 + $0x14] ss:$8 sps:$4 sm:$0xff]   ;;  %v2612_v24 = vld [vmem:[#allocation3 + $0x120] ss:$8 sps:$4 sm:$0xff]   ;;  %v2615_v26 = vld [vmem:[#allocation3 + $0x10] ss:$8 sps:$4 sm:$0xff]  }
  0x2d   : > { %v2616_v25 = vld [vmem:[#allocation3 + $0x114] ss:$8 sps:$4 sm:$0xff]   ;;  %v2619_v27 = vld [vmem:[#allocation3 + $0x4] ss:$8 sps:$4 sm:$0xff]   ;;  %v2618_v28 = vld [vmem:[#allocation3 + $0x110] ss:$8 sps:$4 sm:$0xff]  }
  0x2e   : > { %1839 = vmatpush1.bf16.msra.mxu0 %v2591_v9  ;;  %v2622_v29 = vld [vmem:[#allocation3 + $0x104] ss:$8 sps:$4 sm:$0xff]   ;;  %v2621_v30 = vld [vmem:[#allocation3] ss:$8 sps:$4 sm:$0xff]   ;;  %p179_p6 = scmp.lt.s32.totalorder %s3086_s16, 1  ;;  %vm236_vm3 = vcmask 1042432  }
  0x2f   : > { %1840 = vmatprep.subr.bf16.mxu0 %v2595_v11  ;;  %1880 = vmatpush1.bf16.msra.mxu1 %v2594_v12  ;;  %v2625_v31 = vld [vmem:[#allocation3 + $0xf4] ss:$8 sps:$4 sm:$0xff]   ;;  %v2624_v32 = vld [vmem:[#allocation3 + $0x100] ss:$8 sps:$4 sm:$0xff]   ;;  %v2627_v34 = vld [vmem:[#allocation3 + $0xf0] ss:$8 sps:$4 sm:$0xff]  }
  0x30   : > { %1881 = vmatprep.subr.bf16.mxu1 %v2598_v13  ;;  %v2628_v33 = vld [vmem:[#allocation3 + $0x1f4] ss:$8 sps:$4 sm:$0xff]   ;;  %s180_s5 = scalar_select %p179_p6, %s3086_s16, 1  ;;  %v2631_v35 = vld [vmem:[#allocation3 + $0xe4] ss:$8 sps:$4 sm:$0xff]   ;;  %vm237_vm4 = vcmask 1046532  }
  0x31   : > { %v2630_v36 = vld [vmem:[#allocation3 + $0x1f0] ss:$8 sps:$4 sm:$0xff]   ;;  %v2634_v37 = vld [vmem:[#allocation3 + $0x1e4] ss:$8 sps:$4 sm:$0xff]   ;;  %v2633_v38 = vld [vmem:[#allocation3 + $0xe0] ss:$8 sps:$4 sm:$0xff]  }
  0x32   : > { %1841 = vmatpush1.bf16.msra.mxu0 %v2597_v14  ;;  %s2523_s6 = smul.u32 24, %s180_s5  ;;  %v2637_v39 = vld [vmem:[#allocation3 + $0xd4] ss:$8 sps:$4 sm:$0xff]   ;;  %v2636_v40 = vld [vmem:[#allocation3 + $0x1e0] ss:$8 sps:$4 sm:$0xff]   ;;  %vm3163_vm5 = vmor %vm236_vm3, %vm237_vm4  ;;  %vm306_vm9 = vcmask 1041408  }
  0x33   : > { %1842 = vmatprep.subr.bf16.mxu0 %v2601_v15  ;;  %1882 = vmatpush1.bf16.msra.mxu1 %v2600_v16  ;;  %v2640_v41 = vld [vmem:[#allocation3 + $0x1d4] ss:$8 sps:$4 sm:$0xff]   ;;  %v2639_v42 = vld [vmem:[#allocation3 + $0xd0] ss:$8 sps:$4 sm:$0xff]   ;;  %v2643_v43 = vld [vmem:[#allocation3 + $0xc4] ss:$8 sps:$4 sm:$0xff]  }
  0x34   : > { %1883 = vmatprep.subr.bf16.mxu1 %v2604_v17  ;;  %s3136_s9 = scalar_lea.vmem %s3268_s0, %s2523_s6  ;;  %vm193_vm0 = vsmask.f32 3328  ;;  %v2642_v44 = vld [vmem:[#allocation3 + $0x1d0] ss:$8 sps:$4 sm:$0xff]   ;;  %vm194_vm1 = vsmask.f32 7440 }
  0x35   : > { %v2645_v45 = vld [vmem:[#allocation3 + $0xc0] ss:$8 sps:$4 sm:$0xff]   ;;  %v2646_v46 = vld [vmem:[#allocation3 + $0x1c4] ss:$8 sps:$4 sm:$0xff]   ;;  %v2649_v52 = vld [vmem:[#allocation3 + $0xb4] ss:$8 sps:$4 sm:$0xff]  }
  0x36   : > { %1843 = vmatpush1.bf16.msra.mxu0 %v2603_v18  ;;  %v3139_v47 = vld [vmem:[%s3136_s9] sm:$0xff]  ;;  %v186_v53 = vld [vmem:[%s3136_s9 + $0x8] sm:$0xf]  ;;  %v191_v54 = vld [vmem:[%s3136_s9 + $0xc] sm:$0x11]  ;;  %vm307_vm10 = vcmask 1045508  }
  0x37   : > { %1844 = vmatprep.subr.bf16.mxu0 %v2607_v19  ;;  %1884 = vmatpush1.bf16.msra.mxu1 %v2606_v20  ;;  %v2648_v48 = vld [vmem:[#allocation3 + $0x1c0] ss:$8 sps:$4 sm:$0xff]   ;;  %v2263_v49 = vcombine.high %v3139_v47, %v3139_v47  ;;  %v197_v50 = vshrl.u32 %v3139_v47, 16  ;;  %v200_v51 = vshll.u32 %v3139_v47, 16  ;;  %188 = vst [vmem:[#allocation2 + $0x8] sm:$0xf] %v186_v53  ;;  %vm3149_vm2 = vmor %vm193_vm0, %vm194_vm1  ;;  %v2262_v17 = vcombine.low %v3139_v47, %v3139_v47 }
  0x38   : > { %1885 = vmatprep.subr.bf16.mxu1 %v2610_v21  ;;  %v206_v57 = vshll.u32 %v191_v54, 16  ;;  %v2652_v58 = vld [vmem:[#allocation3 + $0x1b4] ss:$8 sps:$4 sm:$0xff]   ;;  %v2651_v59 = vld [vmem:[#allocation3 + $0xb0] ss:$8 sps:$4 sm:$0xff]   ;;  %vm3205_vm11 = vmor %vm306_vm9, %vm307_vm10  ;;  %s176_s17 = sand.u32 1, %s3030_s13  }
  0x39   : > { %1866 = vmatprep.mubr.bf16.mxu0 %v2263_v49  ;;  %v199_v55 = vrot.slane %v197_v50, 4  ;;  %v202_v56 = vrot.slane %v200_v51, 5  ;;  %v2655_v62 = vld [vmem:[#allocation3 + $0xa4] ss:$8 sps:$4 sm:$0xff]   ;;  %v2654_v0 = vld [vmem:[#allocation3 + $0x1b0] ss:$8 sps:$4 sm:$0xff]  }
  0x3a   : > { %1845 = vmatpush1.bf16.msra.mxu0 %v2609_v22  ;;  %v208_v61 = vrot.slane %v206_v57, 5  ;;  %v2658_v2 = vld [vmem:[#allocation3 + $0x1a4] ss:$8 sps:$4 sm:$0xff]   ;;  %v2657_v3 = vld [vmem:[#allocation3 + $0xa0] ss:$8 sps:$4 sm:$0xff]   ;;  %s2256_s19 = sshll.u32 %s176_s17, 4 }
  0x3b   : > { %1846 = vmatprep.subr.bf16.mxu0 %v2613_v23  ;;  %1886 = vmatpush1.bf16.msra.mxu1 %v2612_v24  ;;  %v203_v60 = vor.u32 %v202_v56, %v199_v55  ;;  %v2661_v5 = vld [vmem:[#allocation3 + $0x94] ss:$8 sps:$4 sm:$0xff]   ;;  %v2660_v6 = vld [vmem:[#allocation3 + $0x1a0] ss:$8 sps:$4 sm:$0xff]   ;;  %v2663_v8 = vld [vmem:[#allocation3 + $0x90] ss:$8 sps:$4 sm:$0xff]  }
  0x3c   : > { %1887 = vmatprep.subr.bf16.mxu1 %v2616_v25  ;;  %v2664_v7 = vld [vmem:[#allocation3 + $0x194] ss:$8 sps:$4 sm:$0xff]   ;;  %v2667_v9 = vld [vmem:[#allocation3 + $0x84] ss:$8 sps:$4 sm:$0xff]   ;;  %v2666_v10 = vld [vmem:[#allocation3 + $0x190] ss:$8 sps:$4 sm:$0xff]  }
  0x3d   : > { %v204_v1 = vrot.slane %v203_v60, 4  ;;  %v2670_v11 = vld [vmem:[#allocation3 + $0x184] ss:$8 sps:$4 sm:$0xff]   ;;  %v2669_v12 = vld [vmem:[#allocation3 + $0x80] ss:$8 sps:$4 sm:$0xff]   ;;  %s2522_s20 = sshll.u32 %s3086_s16, 8 }
  0x3e   : > { %1847 = vmatpush1.bf16.msra.mxu0 %v2615_v26  ;;  %v2677_v14 = vld [vmem:[#allocation3 + $0x274] ss:$8 sps:$4 sm:$0xff]   ;;  %v2674_v16 = vld [vmem:[#allocation3 + $0x180] ss:$8 sps:$4 sm:$0xff]   ;;  %v2675_v19 = vld [vmem:[#allocation3 + $0x270] ss:$8 sps:$4 sm:$0xff]   ;;  %s3233_s28 = scalar_lea.hbm %s3271_s3, %s2522_s20 }
  0x3f   : > { %1848 = vmatprep.subr.bf16.mxu0 %v2619_v27  ;;  %1888 = vmatpush1.bf16.msra.mxu1 %v2618_v28  ;;  %v209_v4 = vsel %vm3149_vm2, %v204_v1, %v208_v61  ;;  %v2682_v18 = vld [vmem:[#allocation3 + $0x374] ss:$8 sps:$4 sm:$0xff]   ;;  %v2685_v21 = vld [vmem:[#allocation3 + $0x264] ss:$8 sps:$4 sm:$0xff]   ;;  %v2680_v22 = vld [vmem:[#allocation3 + $0x370] ss:$8 sps:$4 sm:$0xff]  }
  0x40   : > { %1889 = vmatprep.subr.bf16.mxu1 %v2622_v29  ;;  %226 = vst [vmem:[#allocation2 + $0xc] sm:$0xff] %v209_v4  ;;  %v2688_v23 = vld [vmem:[#allocation3 + $0x364] ss:$8 sps:$4 sm:$0xff]   ;;  %v2683_v24 = vld [vmem:[#allocation3 + $0x260] ss:$8 sps:$4 sm:$0xff]   ;;  %s178_s24 = scalar_lea.vmem [#allocation6], %s2256_s19 }
  0x41   : > { %v2691_v25 = vld [vmem:[#allocation3 + $0x254] ss:$8 sps:$4 sm:$0xff]   ;;  %v2686_v26 = vld [vmem:[#allocation3 + $0x360] ss:$8 sps:$4 sm:$0xff]   ;;  %v2689_v28 = vld [vmem:[#allocation3 + $0x250] ss:$8 sps:$4 sm:$0xff]  }
  0x42   : > { %1849 = vmatpush1.bf16.msra.mxu0 %v2621_v30  ;;  %v2694_v27 = vld [vmem:[#allocation3 + $0x354] ss:$8 sps:$4 sm:$0xff]   ;;  %v2697_v29 = vld [vmem:[#allocation3 + $0x244] ss:$8 sps:$4 sm:$0xff]   ;;  %v2692_v30 = vld [vmem:[#allocation3 + $0x350] ss:$8 sps:$4 sm:$0xff]  }
  0x43   : > { %1850 = vmatprep.subr.bf16.mxu0 %v2625_v31  ;;  %1890 = vmatpush1.bf16.msra.mxu1 %v2624_v32  ;;  %v2700_v31 = vld [vmem:[#allocation3 + $0x344] ss:$8 sps:$4 sm:$0xff]   ;;  %v2695_v32 = vld [vmem:[#allocation3 + $0x240] ss:$8 sps:$4 sm:$0xff]   ;;  %v2716_v49 = vld [vmem:[#allocation3 + $0x310] ss:$8 sps:$4 sm:$0xff]  }
  0x44   : > { %1891 = vmatprep.subr.bf16.mxu1 %v2628_v33  ;;  %v2703_v33 = vld [vmem:[#allocation3 + $0x234] ss:$8 sps:$4 sm:$0xff]   ;;  %v2721_v50 = vld [vmem:[#allocation3 + $0x204] ss:$8 sps:$4 sm:$0xff]   ;;  %v2719_v60 = vld [vmem:[#allocation3 + $0x200] ss:$8 sps:$4 sm:$0xff]  }
  0x45   : > { %v228_v54 = vld [vmem:[%s3136_s9] sm:$0xee]  ;;  %v230_v55 = vld [vmem:[%s3136_s9 + $0xc] sm:$0x11]  ;;  %vm255_vm6 = vsmask.f32 2304 }
  0x46   : > { %1851 = vmatpush2.bf16.msra.mxu0 %v2627_v34  ;;  %v2698_v34 = vld [vmem:[#allocation3 + $0x340] ss:$8 sps:$4 sm:$0xff]   ;;  %v2724_v57 = vld [vmem:[#allocation3 + $0x304] ss:$8 sps:$4 sm:$0xff]   ;;  %vm256_vm7 = vsmask.f32 6416 }
  0x47   : > { %1852 = vmatprep.subr.bf16.mxu0 %v2631_v35  ;;  %1892 = vmatpush2.bf16.msra.mxu1 %v2630_v36  ;;  %v322_v13 = vld [vmem:[#allocation2 + $0x8] sm:$0xff]  ;;  %v2706_v35 = vld [vmem:[#allocation3 + $0x334] ss:$8 sps:$4 sm:$0xff]   ;;  %vm3187_vm8 = vmor %vm255_vm6, %vm256_vm7  ;;  %s2179_s25 = sshll.u32 %s178_s24, 4  ;;  %s2165_s29 = scalar_lea.sflag [#allocation5], %s176_s17  ;;  %s2180_s25 = int_to_ptr.vmem [resolvable:$true] %s2179_s25 }
  0x48   : > { %1893 = vmatprep.subr.bf16.mxu1 %v2634_v37  ;;  %v2265_v15 = vcombine.high %v322_v13, %v322_v13  ;;  %v2264_v20 = vcombine.low %v322_v13, %v322_v13  ;;  %v2701_v36 = vld [vmem:[#allocation3 + $0x230] ss:$8 sps:$4 sm:$0xff]   ;;  %v2709_v37 = vld [vmem:[#allocation3 + $0x224] ss:$8 sps:$4 sm:$0xff]   ;;  %v2734_v13 = vld [vmem:[#allocation3 + $0x3e0] ss:$8 sps:$4 sm:$0xff]  }
  0x49   : > { %s2974_s30 = scalar_lea.vmem %s2180_s25, 256  ;;  %s3044_s16 = smov [#allocation6]  }
  0x4a   : > { %1853 = vmatpush2.bf16.msra.mxu0 %v2633_v38  ;;  %1907 = vmatprep.mubr.bf16.mxu1 %v2265_v15  ;;  %v2704_v38 = vld [vmem:[#allocation3 + $0x330] ss:$8 sps:$4 sm:$0xff]   ;;  %p2975_p8 = scmp.ne.s32.totalorder %s2180_s25, %s2974_s30  ;;  %s2978_s4 = sshll.u32 %s3044_s16, 4  ;;  %s2979_s4 = int_to_ptr.vmem [resolvable:$false] %s2978_s4 }
  0x4b   : > { %1854 = vmatprep.subr.bf16.mxu0 %v2637_v39  ;;  %1894 = vmatpush2.bf16.msra.mxu1 %v2636_v40  ;;  %v2712_v39 = vld [vmem:[#allocation3 + $0x324] ss:$8 sps:$4 sm:$0xff]   ;;  %v2707_v40 = vld [vmem:[#allocation3 + $0x220] ss:$8 sps:$4 sm:$0xff]   ;;  %v2737_v15 = vld [vmem:[#allocation3 + $0x2d0] ss:$8 sps:$4 sm:$0xff]   ;;  %p2981_p11 = scmp.lt.s32.totalorder %s2180_s25, %s2979_s4 }
  0x4c   : > { %1895 = vmatprep.subr.bf16.mxu1 %v2640_v41  ;;  %v2715_v41 = vld [vmem:[#allocation3 + $0x214] ss:$8 sps:$4 sm:$0xff]   ;;  %p2976_p9 = pnand %p2975_p8, %p3103_p5  ;;  %s2980_s5 = scalar_lea.vmem %s2979_s4, 512 }
  0x4d   : > { %p2982_p12 = scmp.lt.s32.totalorder %s2980_s5, %s2974_s30 }
  0x4e   : > { %1855 = vmatpush2.bf16.msra.mxu0 %v2639_v42  ;;  %v2710_v42 = vld [vmem:[#allocation3 + $0x320] ss:$8 sps:$4 sm:$0xff]   ;;  %p2977_p10 = pneg %p2976_p9 }
  0x4f   : > { %1856 = vmatprep.subr.bf16.mxu0 %v2643_v43  ;;  %1896 = vmatpush2.bf16.msra.mxu1 %v2642_v44  ;;  %v2713_v43 = vld [vmem:[#allocation3 + $0x210] ss:$8 sps:$4 sm:$0xff]   ;;  %v2718_v44 = vld [vmem:[#allocation3 + $0x314] ss:$8 sps:$4 sm:$0xff]   ;;  %p2983_p13 = por %p2982_p12, %p2981_p11 }
  0x50   : > { %1897 = vmatprep.subr.bf16.mxu1 %v2646_v46  ;;  %v192_v46 = vld [vmem:[%s3136_s9 + $0x14] sm:$0x1] }
  0x51   : > { %v220_v51 = vshll.u32 %v192_v46, 16  ;;  %v2786_v46 = vld [vmem:[#allocation3 + $0x564] ss:$8 sps:$4 sm:$0xff]   ;;  %p2984_p0 = pnand %p2983_p13, %p2977_p10 }
  0x52   : > { %1857 = vmatpush2.bf16.msra.mxu0 %v2645_v45  ;;  %v190_v45 = vld [vmem:[%s3136_s9 + $0x8] sm:$0xf] }
  0x53   : > { %1858 = vmatprep.subr.bf16.mxu0 %v2649_v52  ;;  %1898 = vmatpush2.bf16.msra.mxu1 %v2648_v48  ;;  %v211_v47 = vshrl.u32 %v190_v45, 16  ;;  %v214_v48 = vshll.u32 %v190_v45, 16  ;;  %v2781_v45 = vld [vmem:[#allocation3 + $0x460] ss:$8 sps:$4 sm:$0xff]  }
  0x54   : > { %1899 = vmatprep.subr.bf16.mxu1 %v2652_v58  ;;  %v2258_v58 = vrot.slane %v228_v54, 9 }
  0x55   : > { %v213_v52 = vrot.slane %v211_v47, 4  ;;  %v216_v53 = vrot.slane %v214_v48, 5  ;;  %v2784_v47 = vld [vmem:[#allocation3 + $0x560] ss:$8 sps:$4 sm:$0xff]   ;;  %v2789_v48 = vld [vmem:[#allocation3 + $0x454] ss:$8 sps:$4 sm:$0xff]  }
  0x56   : > { %1859 = vmatpush2.bf16.msra.mxu0 %v2651_v59  ;;  %v241_v59 = vrot.slane %v230_v55, 5  ;;  %v253_v55 = vld [vmem:[%s3136_s9 + $0xc] sm:$0x33] }
  0x57   : > { %1860 = vmatprep.subr.bf16.mxu0 %v2655_v62  ;;  %1900 = vmatpush2.bf16.msra.mxu1 %v2654_v0  ;;  %v217_v61 = vor.u32 %v216_v53, %v213_v52  ;;  %v222_v62 = vrot.slane %v220_v51, 5  ;;  %v2727_v0 = vld [vmem:[#allocation3 + $0x2f4] ss:$8 sps:$4 sm:$0xff]   ;;  %v251_v52 = vld [vmem:[%s3136_s9] sm:$0xee] }
  0x58   : > { %1901 = vmatprep.subr.bf16.mxu1 %v2658_v2  ;;  %v3169_v1 = vsel %vm3163_vm5, %v2258_v58, %v241_v59  ;;  %v2722_v2 = vld [vmem:[#allocation3 + $0x300] ss:$8 sps:$4 sm:$0xff]   ;;  %v2787_v53 = vld [vmem:[#allocation3 + $0x450] ss:$8 sps:$4 sm:$0xff]   ;;  %v262_v58 = vshll.u32 %v251_v52, 16 }
  0x59   : > { %v2269_v4 = vcombine.high %v3169_v1, %v3169_v1  ;;  %v2792_v59 = vld [vmem:[#allocation3 + $0x554] ss:$8 sps:$4 sm:$0xff]  }
  0x5a   : > { %1861 = vmatpush2.bf16.msra.mxu0 %v2657_v3  ;;  %v218_v3 = vrot.slane %v217_v61, 4  ;;  %v268_v61 = vshrl.u32 %v253_v55, 16 }
  0x5b   : > { %1862 = vmatprep.subr.bf16.mxu0 %v2661_v5  ;;  %1902 = vmatpush2.bf16.msra.mxu1 %v2660_v6  ;;  %v2730_v5 = vld [vmem:[#allocation3 + $0x3f4] ss:$8 sps:$4 sm:$0xff]   ;;  %v2725_v6 = vld [vmem:[#allocation3 + $0x2f0] ss:$8 sps:$4 sm:$0xff]  }
  0x5c   : > { %1903 = vmatprep.subr.bf16.mxu1 %v2664_v7  ;;  %v223_v7 = vsel %vm3149_vm2, %v218_v3, %v222_v62  ;;  %v271_v62 = vshll.u32 %v253_v55, 16  ;;  %v252_v3 = vld [vmem:[%s3136_s9 + $0x8] sm:$0xe]  ;;  %v2835_v55 = vld [vmem:[#allocation3 + $0x4d0] ss:$8 sps:$4 sm:$0xff]  }
  0x5d   : > { %227 = vst [vmem:[#allocation2 + $0x14] sm:$0xf] %v223_v7  ;;  %v277_v7 = vshrl.u32 %v252_v3, 16 }
  0x5e   : > { %1863 = vmatpush2.bf16.msra.mxu0 %v2663_v8  ;;  %v2733_v8 = vld [vmem:[#allocation3 + $0x2e4] ss:$8 sps:$4 sm:$0xff]  }
  0x5f   : > { %1864 = vmatprep.subr.bf16.mxu0 %v2667_v9  ;;  %1904 = vmatpush2.bf16.msra.mxu1 %v2666_v10  ;;  %v2728_v9 = vld [vmem:[#allocation3 + $0x3f0] ss:$8 sps:$4 sm:$0xff]   ;;  %v2736_v10 = vld [vmem:[#allocation3 + $0x3e4] ss:$8 sps:$4 sm:$0xff]  }
  0x60   : > { %1905 = vmatprep.subr.bf16.mxu1 %v2670_v11  ;;  %v2731_v11 = vld [vmem:[#allocation3 + $0x2e0] ss:$8 sps:$4 sm:$0xff]  }
  0x62   : > { %1865 = vmatpush2.bf16.msra.mxu0 %v2669_v12  ;;  %v2739_v12 = vld [vmem:[#allocation3 + $0x2d4] ss:$8 sps:$4 sm:$0xff]  }
  0x63   : > { %1916 = vmatprep.subr.bf16.mxu0 %v2677_v14  ;;  %1906 = vmatpush2.bf16.msra.mxu1 %v2674_v16  ;;  %v2742_v14 = vld [vmem:[#allocation3 + $0x3d4] ss:$8 sps:$4 sm:$0xff]   ;;  %v2745_v16 = vld [vmem:[#allocation3 + $0x2c4] ss:$8 sps:$4 sm:$0xff]  }
  0x64   : > { %1957 = vmatprep.subr.bf16.mxu1 %v2682_v18  ;;  %v323_v63 = vld [vmem:[#allocation2 + $0x10] sm:$0xff] }
  0x65   : > { %1867 = vmatmul.mubr.bf16.vlgmr.msra.gmra.mxu0 %v2262_v17  ;;  %v2267_v17 = vcombine.high %v323_v63, %v323_v63  ;;  %v2740_v18 = vld [vmem:[#allocation3 + $0x3d0] ss:$8 sps:$4 sm:$0xff]  }
  0x66   : > { %1917 = vmatpush1.bf16.msra.mxu0 %v2675_v19  ;;  %1908 = vmatmul.mubr.bf16.vlgmr.msra.gmra.mxu1 %v2264_v20  ;;  %v2748_v19 = vld [vmem:[#allocation3 + $0x3c4] ss:$8 sps:$4 sm:$0xff]   ;;  %v2743_v20 = vld [vmem:[#allocation3 + $0x2c0] ss:$8 sps:$4 sm:$0xff]  }
  0x67   : > { %1918 = vmatprep.subr.bf16.mxu0 %v2685_v21  ;;  %1958 = vmatpush1.bf16.msra.mxu1 %v2680_v22  ;;  %v2751_v21 = vld [vmem:[#allocation3 + $0x2b4] ss:$8 sps:$4 sm:$0xff]   ;;  %v2746_v22 = vld [vmem:[#allocation3 + $0x3c0] ss:$8 sps:$4 sm:$0xff]  }
  0x68   : > { %1959 = vmatprep.subr.bf16.mxu1 %v2688_v23  ;;  %1989 = vmatprep.mubr.bf16.mxu1 %v2269_v4  ;;  %v2754_v23 = vld [vmem:[#allocation3 + $0x3b4] ss:$8 sps:$4 sm:$0xff]   ;;  %v254_v4 = vld [vmem:[%s3136_s9 + $0x14] sm:$0x3] }
  0x69   : > { %1948 = vmatprep.mubr.bf16.mxu0 %v2267_v17 }
  0x6a   : > { %1919 = vmatpush1.bf16.msra.mxu0 %v2683_v24  ;;  %v2749_v24 = vld [vmem:[#allocation3 + $0x2b0] ss:$8 sps:$4 sm:$0xff]  }
  0x6b   : > { %1920 = vmatprep.subr.bf16.mxu0 %v2691_v25  ;;  %1960 = vmatpush1.bf16.msra.mxu1 %v2686_v26  ;;  %v2757_v25 = vld [vmem:[#allocation3 + $0x2a4] ss:$8 sps:$4 sm:$0xff]   ;;  %v2752_v26 = vld [vmem:[#allocation3 + $0x3b0] ss:$8 sps:$4 sm:$0xff]  }
  0x6c   : > { %1961 = vmatprep.subr.bf16.mxu1 %v2694_v27  ;;  %v2760_v27 = vld [vmem:[#allocation3 + $0x3a4] ss:$8 sps:$4 sm:$0xff]  }
  0x6e   : > { %1921 = vmatpush1.bf16.msra.mxu0 %v2689_v28  ;;  %v2755_v28 = vld [vmem:[#allocation3 + $0x2a0] ss:$8 sps:$4 sm:$0xff]  }
  0x6f   : > { %1922 = vmatprep.subr.bf16.mxu0 %v2697_v29  ;;  %1962 = vmatpush1.bf16.msra.mxu1 %v2692_v30  ;;  %v2763_v29 = vld [vmem:[#allocation3 + $0x294] ss:$8 sps:$4 sm:$0xff]   ;;  %v2758_v30 = vld [vmem:[#allocation3 + $0x3a0] ss:$8 sps:$4 sm:$0xff]  }
  0x70   : > { %1963 = vmatprep.subr.bf16.mxu1 %v2700_v31  ;;  %v2766_v31 = vld [vmem:[#allocation3 + $0x394] ss:$8 sps:$4 sm:$0xff]  }
  0x72   : > { %1923 = vmatpush1.bf16.msra.mxu0 %v2695_v32  ;;  %v2761_v32 = vld [vmem:[#allocation3 + $0x290] ss:$8 sps:$4 sm:$0xff]  }
  0x73   : > { %1924 = vmatprep.subr.bf16.mxu0 %v2703_v33  ;;  %1964 = vmatpush1.bf16.msra.mxu1 %v2698_v34  ;;  %v2769_v33 = vld [vmem:[#allocation3 + $0x284] ss:$8 sps:$4 sm:$0xff]   ;;  %v2764_v34 = vld [vmem:[#allocation3 + $0x390] ss:$8 sps:$4 sm:$0xff]  }
  0x74   : > { %1965 = vmatprep.subr.bf16.mxu1 %v2706_v35  ;;  %v2772_v35 = vld [vmem:[#allocation3 + $0x384] ss:$8 sps:$4 sm:$0xff]  }
  0x76   : > { %1925 = vmatpush1.bf16.msra.mxu0 %v2701_v36  ;;  %v2767_v36 = vld [vmem:[#allocation3 + $0x280] ss:$8 sps:$4 sm:$0xff]  }
  0x77   : > { %1926 = vmatprep.subr.bf16.mxu0 %v2709_v37  ;;  %1966 = vmatpush1.bf16.msra.mxu1 %v2704_v38  ;;  %v2777_v37 = vld [vmem:[#allocation3 + $0x474] ss:$8 sps:$4 sm:$0xff]   ;;  %v2770_v38 = vld [vmem:[#allocation3 + $0x380] ss:$8 sps:$4 sm:$0xff]  }
  0x78   : > { %1967 = vmatprep.subr.bf16.mxu1 %v2712_v39  ;;  %v2266_v39 = vcombine.low %v323_v63, %v323_v63 }
  0x7a   : > { %1927 = vmatpush1.bf16.msra.mxu0 %v2707_v40  ;;  %v2780_v40 = vld [vmem:[#allocation3 + $0x574] ss:$8 sps:$4 sm:$0xff]  }
  0x7b   : > { %1928 = vmatprep.subr.bf16.mxu0 %v2715_v41  ;;  %1968 = vmatpush1.bf16.msra.mxu1 %v2710_v42  ;;  %v2775_v41 = vld [vmem:[#allocation3 + $0x470] ss:$8 sps:$4 sm:$0xff]   ;;  %v2268_v42 = vcombine.low %v3169_v1, %v3169_v1 }
  0x7c   : > { %1969 = vmatprep.subr.bf16.mxu1 %v2718_v44  ;;  %v2783_v44 = vld [vmem:[#allocation3 + $0x464] ss:$8 sps:$4 sm:$0xff]  }
  0x7e   : > { %1929 = vmatpush1.bf16.msra.mxu0 %v2713_v43  ;;  %v2778_v43 = vld [vmem:[#allocation3 + $0x570] ss:$8 sps:$4 sm:$0xff]  }
  0x7f   : > { %1930 = vmatprep.subr.bf16.mxu0 %v2721_v50  ;;  %1970 = vmatpush1.bf16.msra.mxu1 %v2716_v49  ;;  %v229_v49 = vld [vmem:[%s3136_s9 + $0x8] sm:$0xe]  ;;  %v231_v50 = vld [vmem:[%s3136_s9 + $0x14] sm:$0x1] }
  0x80   : > { %1971 = vmatprep.subr.bf16.mxu1 %v2724_v57  ;;  %v2259_v51 = vrot.slane %v229_v49, 9  ;;  %v245_v54 = vrot.slane %v231_v50, 5  ;;  %v259_v57 = vshrl.u32 %v251_v52, 16  ;;  %v2831_v49 = vld [vmem:[#allocation3 + $0x4e4] ss:$8 sps:$4 sm:$0xff]  }
  0x81   : > { %v2826_v50 = vld [vmem:[#allocation3 + $0x5f0] ss:$8 sps:$4 sm:$0xff]   ;;  %v2829_v52 = vld [vmem:[#allocation3 + $0x4e0] ss:$8 sps:$4 sm:$0xff]  }
  0x82   : > { %1931 = vmatpush1.bf16.msra.mxu0 %v2719_v60  ;;  %v2795_v60 = vld [vmem:[#allocation3 + $0x444] ss:$8 sps:$4 sm:$0xff]   ;;  %v261_v1 = vrot.slane %v259_v57, 5  ;;  %v2840_v57 = vld [vmem:[#allocation3 + $0x5d4] ss:$8 sps:$4 sm:$0xff]  }
  0x83   : > { %1932 = vmatprep.subr.bf16.mxu0 %v2727_v0  ;;  %1972 = vmatpush1.bf16.msra.mxu1 %v2722_v2  ;;  %v246_v0 = vsel %vm3163_vm5, %v2259_v51, %v245_v54  ;;  %v264_v2 = vrot.slane %v262_v58, 6  ;;  %v2834_v51 = vld [vmem:[#allocation3 + $0x5e4] ss:$8 sps:$4 sm:$0xff]   ;;  %v2832_v54 = vld [vmem:[#allocation3 + $0x5e0] ss:$8 sps:$4 sm:$0xff]  }
  0x84   : > { %1973 = vmatprep.subr.bf16.mxu1 %v2730_v5  ;;  %250 = vst [vmem:[#allocation2 + $0x20] sm:$0xf] %v246_v0  ;;  %v270_v5 = vrot.slane %v268_v61, 5  ;;  %v2838_v58 = vld [vmem:[#allocation3 + $0x5d0] ss:$8 sps:$4 sm:$0xff]  }
  0x85   : > { %v265_v56 = vor.u32 %v264_v2, %v261_v1  ;;  %v301_v61 = vld [vmem:[%s3136_s9 + $0x14] sm:$0x3]  ;;  %v298_v2 = vld [vmem:[%s3136_s9] sm:$0xcc] }
  0x86   : > { %1933 = vmatpush2.bf16.msra.mxu0 %v2725_v6  ;;  %v273_v6 = vrot.slane %v271_v62, 6  ;;  %v315_v1 = vrot.slane %v301_v61, 6  ;;  %v2904_v61 = vld [vmem:[#allocation3 + $0x6f4] ss:$8 sps:$4 sm:$0xff]   ;;  %v2941_v62 = vld [vmem:[#allocation3 + $0x700] ss:$8 sps:$4 sm:$0xff]  }
  0x87   : > { %1934 = vmatprep.subr.bf16.mxu0 %v2733_v8  ;;  %1974 = vmatpush2.bf16.msra.mxu1 %v2728_v9  ;;  %v280_v8 = vshll.u32 %v252_v3, 16  ;;  %v2790_v9 = vld [vmem:[#allocation3 + $0x550] ss:$8 sps:$4 sm:$0xff]   ;;  %v266_v17 = vrot.slane %v265_v56, 4  ;;  %v2844_v56 = vld [vmem:[#allocation3 + $0x5c0] ss:$8 sps:$4 sm:$0xff]  }
  0x88   : > { %1975 = vmatprep.subr.bf16.mxu1 %v2736_v10  ;;  %v300_v3 = vld [vmem:[%s3136_s9 + $0xc] sm:$0x33] }
  0x89   : > { %v282_v63 = vrot.slane %v280_v8, 6 }
  0x8a   : > { %1935 = vmatpush2.bf16.msra.mxu0 %v2731_v11  ;;  %v286_v11 = vshrl.u32 %v254_v4, 16 }
  0x8b   : > { %1936 = vmatprep.subr.bf16.mxu0 %v2739_v12  ;;  %1976 = vmatpush2.bf16.msra.mxu1 %v2734_v13  ;;  %v289_v12 = vshll.u32 %v254_v4, 16  ;;  %v2798_v13 = vld [vmem:[#allocation3 + $0x544] ss:$8 sps:$4 sm:$0xff]  }
  0x8c   : > { %1977 = vmatprep.subr.bf16.mxu1 %v2742_v14  ;;  %v274_v14 = vor.u32 %v273_v6, %v270_v5  ;;  %v2846_v4 = vld [vmem:[#allocation3 + $0x5c4] ss:$8 sps:$4 sm:$0xff]   ;;  %v2260_v5 = vrot.slane %v298_v2, 10  ;;  %v311_v6 = vrot.slane %v300_v3, 6  ;;  %v2908_v3 = vld [vmem:[#allocation3 + $0x6e0] ss:$8 sps:$4 sm:$0xff]  }
  0x8e   : > { %1937 = vmatpush2.bf16.msra.mxu0 %v2737_v15  ;;  %v279_v15 = vrot.slane %v277_v7, 5  ;;  %v2841_v7 = vld [vmem:[#allocation3 + $0x4c0] ss:$8 sps:$4 sm:$0xff]   ;;  %v3215_v10 = vsel %vm3205_vm11, %v2260_v5, %v311_v6  ;;  %v2914_v5 = vld [vmem:[#allocation3 + $0x6d0] ss:$8 sps:$4 sm:$0xff]  }
  0x8f   : > { %1938 = vmatprep.subr.bf16.mxu0 %v2745_v16  ;;  %1978 = vmatpush2.bf16.msra.mxu1 %v2740_v18  ;;  %v2793_v16 = vld [vmem:[#allocation3 + $0x440] ss:$8 sps:$4 sm:$0xff]   ;;  %v288_v18 = vrot.slane %v286_v11, 5  ;;  %v2852_v11 = vld [vmem:[#allocation3 + $0x5b4] ss:$8 sps:$4 sm:$0xff]  }
  0x90   : > { %1979 = vmatprep.subr.bf16.mxu1 %v2748_v19  ;;  %v291_v19 = vrot.slane %v289_v12, 6  ;;  %v2847_v12 = vld [vmem:[#allocation3 + $0x4b0] ss:$8 sps:$4 sm:$0xff]   ;;  %v2922_v6 = vld [vmem:[#allocation3 + $0x6c4] ss:$8 sps:$4 sm:$0xff]  }
  0x92   : > { %1939 = vmatpush2.bf16.msra.mxu0 %v2743_v20  ;;  %v2801_v20 = vld [vmem:[#allocation3 + $0x434] ss:$8 sps:$4 sm:$0xff]  }
  0x93   : > { %1940 = vmatprep.subr.bf16.mxu0 %v2751_v21  ;;  %1980 = vmatpush2.bf16.msra.mxu1 %v2746_v22  ;;  %v283_v21 = vor.u32 %v282_v63, %v279_v15  ;;  %v2796_v22 = vld [vmem:[#allocation3 + $0x540] ss:$8 sps:$4 sm:$0xff]   ;;  %v2858_v15 = vld [vmem:[#allocation3 + $0x5a4] ss:$8 sps:$4 sm:$0xff]  }
  0x94   : > { %1981 = vmatprep.subr.bf16.mxu1 %v2754_v23  ;;  %v275_v23 = vsel %vm3187_vm8, %v266_v17, %v274_v14  ;;  %v2850_v14 = vld [vmem:[#allocation3 + $0x5b0] ss:$8 sps:$4 sm:$0xff]   ;;  %v2853_v63 = vld [vmem:[#allocation3 + $0x4a0] ss:$8 sps:$4 sm:$0xff]  }
  0x95   : > { %296 = vst [vmem:[#allocation2 + $0x24] sm:$0xff] %v275_v23  ;;  %v2856_v17 = vld [vmem:[#allocation3 + $0x5a0] ss:$8 sps:$4 sm:$0xff]  }
  0x96   : > { %1941 = vmatpush2.bf16.msra.mxu0 %v2749_v24  ;;  %v292_v24 = vor.u32 %v291_v19, %v288_v18  ;;  %v2864_v18 = vld [vmem:[#allocation3 + $0x594] ss:$8 sps:$4 sm:$0xff]   ;;  %v2859_v19 = vld [vmem:[#allocation3 + $0x490] ss:$8 sps:$4 sm:$0xff]   ;;  %v2865_v23 = vld [vmem:[#allocation3 + $0x480] ss:$8 sps:$4 sm:$0xff]  }
  0x97   : > { %1942 = vmatprep.subr.bf16.mxu0 %v2757_v25  ;;  %1982 = vmatpush2.bf16.msra.mxu1 %v2752_v26  ;;  %v2804_v25 = vld [vmem:[#allocation3 + $0x534] ss:$8 sps:$4 sm:$0xff]   ;;  %v284_v26 = vrot.slane %v283_v21, 4  ;;  %v2862_v21 = vld [vmem:[#allocation3 + $0x590] ss:$8 sps:$4 sm:$0xff]  }
  0x98   : > { %1983 = vmatprep.subr.bf16.mxu1 %v2760_v27  ;;  %v2799_v27 = vld [vmem:[#allocation3 + $0x430] ss:$8 sps:$4 sm:$0xff]  }
  0x9a   : > { %1943 = vmatpush2.bf16.msra.mxu0 %v2755_v28  ;;  %v2807_v28 = vld [vmem:[#allocation3 + $0x424] ss:$8 sps:$4 sm:$0xff]  }
  0x9b   : > { %1944 = vmatprep.subr.bf16.mxu0 %v2763_v29  ;;  %1984 = vmatpush2.bf16.msra.mxu1 %v2758_v30  ;;  %v293_v29 = vsel %vm3187_vm8, %v284_v26, %v292_v24  ;;  %v2802_v30 = vld [vmem:[#allocation3 + $0x530] ss:$8 sps:$4 sm:$0xff]   ;;  %v2875_v24 = vld [vmem:[#allocation3 + $0x674] ss:$8 sps:$4 sm:$0xff]  }
  0x9c   : > { %1985 = vmatprep.subr.bf16.mxu1 %v2766_v31  ;;  %297 = vst [vmem:[#allocation2 + $0x2c] sm:$0xf] %v293_v29  ;;  %v2810_v31 = vld [vmem:[#allocation3 + $0x524] ss:$8 sps:$4 sm:$0xff]   ;;  %v2275_v29 = vcombine.high %v3215_v10, %v3215_v10 }
  0x9e   : > { %1945 = vmatpush2.bf16.msra.mxu0 %v2761_v32  ;;  %v2805_v32 = vld [vmem:[#allocation3 + $0x420] ss:$8 sps:$4 sm:$0xff]  }
  0x9f   : > { %1946 = vmatprep.subr.bf16.mxu0 %v2769_v33  ;;  %1986 = vmatpush2.bf16.msra.mxu1 %v2764_v34  ;;  %v2808_v33 = vld [vmem:[#allocation3 + $0x520] ss:$8 sps:$4 sm:$0xff]   ;;  %v2813_v34 = vld [vmem:[#allocation3 + $0x414] ss:$8 sps:$4 sm:$0xff]  }
  0xa0   : > { %1987 = vmatprep.subr.bf16.mxu1 %v2772_v35  ;;  %v3195_v35 = vld [vmem:[#allocation2 + $0x20] sm:$0xff] }
  0xa1   : > { %v2270_v26 = vcombine.low %v3195_v35, %v3195_v35 }
  0xa2   : > { %1947 = vmatpush2.bf16.msra.mxu0 %v2767_v36  ;;  %v2816_v36 = vld [vmem:[#allocation3 + $0x514] ss:$8 sps:$4 sm:$0xff]  }
  0xa3   : > { %1998 = vmatprep.subr.bf16.mxu0 %v2777_v37  ;;  %1988 = vmatpush2.bf16.msra.mxu1 %v2770_v38  ;;  %v2271_v37 = vcombine.high %v3195_v35, %v3195_v35  ;;  %v2811_v38 = vld [vmem:[#allocation3 + $0x410] ss:$8 sps:$4 sm:$0xff]   ;;  %v2883_v35 = vld [vmem:[#allocation3 + $0x654] ss:$8 sps:$4 sm:$0xff]  }
  0xa4   : > { %2039 = vmatprep.subr.bf16.mxu1 %v2780_v40  ;;  %v3199_v40 = vld [vmem:[#allocation2 + $0x28] sm:$0xff] }
  0xa5   : > { %1949 = vmatmul.mubr.bf16.vlgmr.msra.gmra.mxu0 %v2266_v39  ;;  %v2819_v39 = vld [vmem:[#allocation3 + $0x404] ss:$8 sps:$4 sm:$0xff]  }
  0xa6   : > { %1999 = vmatpush1.bf16.msra.mxu0 %v2775_v41  ;;  %1990 = vmatmul.mubr.bf16.vlgmr.msra.gmra.mxu1 %v2268_v42  ;;  %v2814_v41 = vld [vmem:[#allocation3 + $0x510] ss:$8 sps:$4 sm:$0xff]   ;;  %v2273_v42 = vcombine.high %v3199_v40, %v3199_v40 }
  0xa7   : > { %2000 = vmatprep.subr.bf16.mxu0 %v2783_v44  ;;  %2040 = vmatpush1.bf16.msra.mxu1 %v2778_v43  ;;  %v2822_v43 = vld [vmem:[#allocation3 + $0x504] ss:$8 sps:$4 sm:$0xff]   ;;  %v2817_v44 = vld [vmem:[#allocation3 + $0x400] ss:$8 sps:$4 sm:$0xff]  }
  0xa8   : > { %2041 = vmatprep.subr.bf16.mxu1 %v2786_v46  ;;  %2030 = vmatprep.mubr.bf16.mxu0 %v2271_v37  ;;  %v2820_v46 = vld [vmem:[#allocation3 + $0x500] ss:$8 sps:$4 sm:$0xff]   ;;  %v3043_v37 = vmov 0  }
  0xa9   : > { %2071 = vmatprep.mubr.bf16.mxu1 %v2273_v42  ;;  %v2919_v42 = vld [vmem:[#allocation3 + $0x744] ss:$8 sps:$4 sm:$0xff]  }
  0xaa   : > { %2001 = vmatpush1.bf16.msra.mxu0 %v2781_v45  ;;  %v2825_v45 = vld [vmem:[#allocation3 + $0x4f4] ss:$8 sps:$4 sm:$0xff]  }
  0xab   : > { %2002 = vmatprep.subr.bf16.mxu0 %v2789_v48  ;;  %2042 = vmatpush1.bf16.msra.mxu1 %v2784_v47  ;;  %v2828_v47 = vld [vmem:[#allocation3 + $0x5f4] ss:$8 sps:$4 sm:$0xff]   ;;  %v2823_v48 = vld [vmem:[#allocation3 + $0x4f0] ss:$8 sps:$4 sm:$0xff]  }
  0xac   : > { %2043 = vmatprep.subr.bf16.mxu1 %v2792_v59  ;;  %v2843_v59 = vld [vmem:[#allocation3 + $0x4c4] ss:$8 sps:$4 sm:$0xff]  }
  0xae   : > { %2003 = vmatpush1.bf16.msra.mxu0 %v2787_v53  ;;  %v2837_v53 = vld [vmem:[#allocation3 + $0x4d4] ss:$8 sps:$4 sm:$0xff]  }
  0xaf   : > { %2004 = vmatprep.subr.bf16.mxu0 %v2795_v60  ;;  %2044 = vmatpush1.bf16.msra.mxu1 %v2790_v9  ;;  %v299_v60 = vld [vmem:[%s3136_s9 + $0x8] sm:$0xc]  ;;  %v2849_v9 = vld [vmem:[#allocation3 + $0x4b4] ss:$8 sps:$4 sm:$0xff]  }
  0xb0   : > { %2045 = vmatprep.subr.bf16.mxu1 %v2798_v13  ;;  %v2261_v0 = vrot.slane %v299_v60, 10  ;;  %v2855_v13 = vld [vmem:[#allocation3 + $0x4a4] ss:$8 sps:$4 sm:$0xff]   ;;  %v2896_v60 = vld [vmem:[#allocation3 + $0x600] ss:$8 sps:$4 sm:$0xff]  }
  0xb2   : > { %2005 = vmatpush1.bf16.msra.mxu0 %v2793_v16  ;;  %v316_v8 = vsel %vm3205_vm11, %v2261_v0, %v315_v1  ;;  %v2861_v16 = vld [vmem:[#allocation3 + $0x494] ss:$8 sps:$4 sm:$0xff]   ;;  %v2902_v0 = vld [vmem:[#allocation3 + $0x6f0] ss:$8 sps:$4 sm:$0xff]   ;;  %v2910_v1 = vld [vmem:[#allocation3 + $0x6e4] ss:$8 sps:$4 sm:$0xff]  }
  0xb3   : > { %2006 = vmatprep.subr.bf16.mxu0 %v2801_v20  ;;  %2046 = vmatpush1.bf16.msra.mxu1 %v2796_v22  ;;  %320 = vst [vmem:[#allocation2 + $0x38] sm:$0xf] %v316_v8  ;;  %v2867_v20 = vld [vmem:[#allocation3 + $0x484] ss:$8 sps:$4 sm:$0xff]   ;;  %v2928_v8 = vld [vmem:[#allocation3 + $0x6b4] ss:$8 sps:$4 sm:$0xff]  }
  0xb4   : > { %2047 = vmatprep.subr.bf16.mxu1 %v2804_v25  ;;  %v2870_v22 = vld [vmem:[#allocation3 + $0x584] ss:$8 sps:$4 sm:$0xff]   ;;  %v2868_v25 = vld [vmem:[#allocation3 + $0x580] ss:$8 sps:$4 sm:$0xff]  }
  0xb6   : > { %2007 = vmatpush1.bf16.msra.mxu0 %v2799_v27  ;;  %v2901_v27 = vld [vmem:[#allocation3 + $0x774] ss:$8 sps:$4 sm:$0xff]  }
  0xb7   : > { %2008 = vmatprep.subr.bf16.mxu0 %v2807_v28  ;;  %2048 = vmatpush1.bf16.msra.mxu1 %v2802_v30  ;;  %v2873_v28 = vld [vmem:[#allocation3 + $0x670] ss:$8 sps:$4 sm:$0xff]   ;;  %v2272_v30 = vcombine.low %v3199_v40, %v3199_v40  ;;  %v2886_v40 = vld [vmem:[#allocation3 + $0x644] ss:$8 sps:$4 sm:$0xff]  }
  0xb8   : > { %2049 = vmatprep.subr.bf16.mxu1 %v2810_v31  ;;  %v2880_v31 = vld [vmem:[#allocation3 + $0x664] ss:$8 sps:$4 sm:$0xff]  }
  0xba   : > { %2009 = vmatpush1.bf16.msra.mxu0 %v2805_v32  ;;  %v2899_v32 = vld [vmem:[#allocation3 + $0x770] ss:$8 sps:$4 sm:$0xff]   ;;  %v2947_v2 = vld [vmem:[#allocation2 + $0x38] ss:$0 sps:$4 sm:$0xff]  }
  0xbb   : > { %2010 = vmatprep.subr.bf16.mxu0 %v2813_v34  ;;  %2050 = vmatpush1.bf16.msra.mxu1 %v2808_v33  ;;  %v2907_v33 = vld [vmem:[#allocation3 + $0x764] ss:$8 sps:$4 sm:$0xff]   ;;  %v2878_v34 = vld [vmem:[#allocation3 + $0x660] ss:$8 sps:$4 sm:$0xff]  }
  0xbc   : > { %2051 = vmatprep.subr.bf16.mxu1 %v2816_v36  ;;  %v2905_v36 = vld [vmem:[#allocation3 + $0x760] ss:$8 sps:$4 sm:$0xff]  }
  0xbe   : > { %2011 = vmatpush1.bf16.msra.mxu0 %v2811_v38  ;;  %v2913_v38 = vld [vmem:[#allocation3 + $0x754] ss:$8 sps:$4 sm:$0xff]  }
  0xbf   : > { %2012 = vmatprep.subr.bf16.mxu0 %v2819_v39  ;;  %2052 = vmatpush1.bf16.msra.mxu1 %v2814_v41  ;;  %v2881_v39 = vld [vmem:[#allocation3 + $0x650] ss:$8 sps:$4 sm:$0xff]  }
  0xc0   : > { %2053 = vmatprep.subr.bf16.mxu1 %v2822_v43  ;;  %v2911_v41 = vld [vmem:[#allocation3 + $0x750] ss:$8 sps:$4 sm:$0xff]   ;;  %v2884_v43 = vld [vmem:[#allocation3 + $0x640] ss:$8 sps:$4 sm:$0xff]  }
  0xc2   : > { %2013 = vmatpush1.bf16.msra.mxu0 %v2817_v44  ;;  %v2889_v44 = vld [vmem:[#allocation3 + $0x634] ss:$8 sps:$4 sm:$0xff]  }
  0xc3   : > { %2014 = vmatprep.subr.bf16.mxu0 %v2825_v45  ;;  %2054 = vmatpush1.bf16.msra.mxu1 %v2820_v46  ;;  %v2917_v45 = vld [vmem:[#allocation3 + $0x740] ss:$8 sps:$4 sm:$0xff]   ;;  %v2925_v46 = vld [vmem:[#allocation3 + $0x734] ss:$8 sps:$4 sm:$0xff]  }
  0xc4   : > { %2055 = vmatprep.subr.bf16.mxu1 %v2828_v47  ;;  %v2887_v47 = vld [vmem:[#allocation3 + $0x630] ss:$8 sps:$4 sm:$0xff]  }
  0xc6   : > { %2015 = vmatpush2.bf16.msra.mxu0 %v2823_v48  ;;  %v2892_v48 = vld [vmem:[#allocation3 + $0x624] ss:$8 sps:$4 sm:$0xff]  }
  0xc7   : > { %2016 = vmatprep.subr.bf16.mxu0 %v2831_v49  ;;  %2056 = vmatpush2.bf16.msra.mxu1 %v2826_v50  ;;  %v2923_v49 = vld [vmem:[#allocation3 + $0x730] ss:$8 sps:$4 sm:$0xff]   ;;  %v2931_v50 = vld [vmem:[#allocation3 + $0x724] ss:$8 sps:$4 sm:$0xff]  }
  0xc8   : > { %2057 = vmatprep.subr.bf16.mxu1 %v2834_v51  ;;  %v2890_v51 = vld [vmem:[#allocation3 + $0x620] ss:$8 sps:$4 sm:$0xff]  }
  0xca   : > { %2017 = vmatpush2.bf16.msra.mxu0 %v2829_v52  ;;  %v2895_v52 = vld [vmem:[#allocation3 + $0x614] ss:$8 sps:$4 sm:$0xff]  }
  0xcb   : > { %2018 = vmatprep.subr.bf16.mxu0 %v2837_v53  ;;  %2058 = vmatpush2.bf16.msra.mxu1 %v2832_v54  ;;  %v2929_v53 = vld [vmem:[#allocation3 + $0x720] ss:$8 sps:$4 sm:$0xff]   ;;  %v2937_v54 = vld [vmem:[#allocation3 + $0x714] ss:$8 sps:$4 sm:$0xff]  }
  0xcc   : > { %2059 = vmatprep.subr.bf16.mxu1 %v2840_v57  ;;  %v2898_v57 = vld [vmem:[#allocation3 + $0x604] ss:$8 sps:$4 sm:$0xff]  }
  0xce   : > { %2019 = vmatpush2.bf16.msra.mxu0 %v2835_v55  ;;  %v2893_v55 = vld [vmem:[#allocation3 + $0x610] ss:$8 sps:$4 sm:$0xff]  }
  0xcf   : > { %2020 = vmatprep.subr.bf16.mxu0 %v2843_v59  ;;  %2060 = vmatpush2.bf16.msra.mxu1 %v2838_v58  ;;  %v2935_v58 = vld [vmem:[#allocation3 + $0x710] ss:$8 sps:$4 sm:$0xff]   ;;  %v2943_v59 = vld [vmem:[#allocation3 + $0x704] ss:$8 sps:$4 sm:$0xff]  }
  0xd0   : > { %2061 = vmatprep.subr.bf16.mxu1 %v2846_v4  ;;  %v2916_v4 = vld [vmem:[#allocation3 + $0x6d4] ss:$8 sps:$4 sm:$0xff]  }
  0xd2   : > { %2021 = vmatpush2.bf16.msra.mxu0 %v2841_v7  ;;  %v2920_v7 = vld [vmem:[#allocation3 + $0x6c0] ss:$8 sps:$4 sm:$0xff]  }
  0xd3   : > { %2022 = vmatprep.subr.bf16.mxu0 %v2849_v9  ;;  %2062 = vmatpush2.bf16.msra.mxu1 %v2844_v56  ;;  %v2926_v9 = vld [vmem:[#allocation3 + $0x6b0] ss:$8 sps:$4 sm:$0xff]   ;;  %v2934_v56 = vld [vmem:[#allocation3 + $0x6a4] ss:$8 sps:$4 sm:$0xff]  }
  0xd4   : > { %2063 = vmatprep.subr.bf16.mxu1 %v2852_v11  ;;  %v2932_v11 = vld [vmem:[#allocation3 + $0x6a0] ss:$8 sps:$4 sm:$0xff]  }
  0xd6   : > { %2023 = vmatpush2.bf16.msra.mxu0 %v2847_v12  ;;  %v571_v12 = vlaneseq }
  0xd7   : > { %2024 = vmatprep.subr.bf16.mxu0 %v2855_v13  ;;  %2064 = vmatpush2.bf16.msra.mxu1 %v2850_v14  ;;  %v2940_v13 = vld [vmem:[#allocation3 + $0x694] ss:$8 sps:$4 sm:$0xff]   ;;  %v2938_v14 = vld [vmem:[#allocation3 + $0x690] ss:$8 sps:$4 sm:$0xff]  }
  0xd8   : > { %2065 = vmatprep.subr.bf16.mxu1 %v2858_v15  ;;  %v572_v15 = vshrl.u32 %v571_v12, 7 }
  0xda   : > { %2025 = vmatpush2.bf16.msra.mxu0 %v2853_v63  ;;  %v2946_v63 = vld [vmem:[#allocation3 + $0x684] ss:$8 sps:$4 sm:$0xff]  }
  0xdb   : > { %2026 = vmatprep.subr.bf16.mxu0 %v2861_v16  ;;  %2066 = vmatpush2.bf16.msra.mxu1 %v2856_v17  ;;  %v2944_v16 = vld [vmem:[#allocation3 + $0x680] ss:$8 sps:$4 sm:$0xff]   ;;  %v573_v17 = vsub.s32 0, %v572_v15 }
  0xdc   : > { %2067 = vmatprep.subr.bf16.mxu1 %v2864_v18  ;;  %v569_v18 = vld [vmem:[%s3270_s2] sm:$0x3] }
  0xde   : > { %2027 = vmatpush2.bf16.msra.mxu0 %v2859_v19  ;;  %v577_v19 = vsub.s32 1, %v572_v15 }
  0xdf   : > { %2028 = vmatprep.subr.bf16.mxu0 %v2867_v20  ;;  %2068 = vmatpush2.bf16.msra.mxu1 %v2862_v21  ;;  %v2274_v20 = vcombine.low %v3215_v10, %v3215_v10  ;;  %v574_v21 = vrot.slane %v569_v18, %v573_v17 }
  0xe0   : > { %2069 = vmatprep.subr.bf16.mxu1 %v2870_v22  ;;  %v578_v22 = vrot.slane %v569_v18, %v577_v19 }
  0xe2   : > { %2029 = vmatpush2.bf16.msra.mxu0 %v2865_v23 }
  0xe3   : > { %2080 = vmatprep.subr.bf16.mxu0 %v2875_v24  ;;  %2070 = vmatpush2.bf16.msra.mxu1 %v2868_v25 }
  0xe4   : > { %2121 = vmatprep.subr.bf16.mxu1 %v2901_v27 }
  0xe5   : > { %2031 = vmatmul.mubr.bf16.vlgmr.msra.gmra.mxu0 %v2270_v26 }
  0xe6   : > { %2081 = vmatpush1.bf16.msra.mxu0 %v2873_v28  ;;  %2112 = vmatprep.mubr.bf16.mxu0 %v2275_v29 }
  0xe7   : > { %2072 = vmatmul.mubr.bf16.vlgmr.msra.gmra.mxu1 %v2272_v30  ;;  %2082 = vmatprep.subr.bf16.mxu0 %v2880_v31 }
  0xe8   : > { %2122 = vmatpush1.bf16.msra.mxu1 %v2899_v32  ;;  %2153 = vmatprep.mubr.bf16.mxu1 %v3043_v37 }
  0xe9   : > { %2123 = vmatprep.subr.bf16.mxu1 %v2907_v33 }
  0xea   : > { %2083 = vmatpush1.bf16.msra.mxu0 %v2878_v34 }
  0xeb   : > { %2084 = vmatprep.subr.bf16.mxu0 %v2883_v35 }
  0xec   : > { %2124 = vmatpush1.bf16.msra.mxu1 %v2905_v36 }
  0xed   : > { %2125 = vmatprep.subr.bf16.mxu1 %v2913_v38 }
  0xee   : > { %2085 = vmatpush1.bf16.msra.mxu0 %v2881_v39 }
  0xef   : > { %2086 = vmatprep.subr.bf16.mxu0 %v2886_v40 }
  0xf0   : > { %2126 = vmatpush1.bf16.msra.mxu1 %v2911_v41 }
  0xf1   : > { %2127 = vmatprep.subr.bf16.mxu1 %v2919_v42 }
  0xf2   : > { %2087 = vmatpush1.bf16.msra.mxu0 %v2884_v43 }
  0xf3   : > { %2088 = vmatprep.subr.bf16.mxu0 %v2889_v44 }
  0xf4   : > { %2128 = vmatpush1.bf16.msra.mxu1 %v2917_v45 }
  0xf5   : > { %2129 = vmatprep.subr.bf16.mxu1 %v2925_v46 }
  0xf6   : > { %2089 = vmatpush1.bf16.msra.mxu0 %v2887_v47 }
  0xf7   : > { %2090 = vmatprep.subr.bf16.mxu0 %v2892_v48 }
  0xf8   : > { %2130 = vmatpush1.bf16.msra.mxu1 %v2923_v49 }
  0xf9   : > { %2131 = vmatprep.subr.bf16.mxu1 %v2931_v50 }
  0xfa   : > { %2091 = vmatpush1.bf16.msra.mxu0 %v2890_v51 }
  0xfb   : > { %2092 = vmatprep.subr.bf16.mxu0 %v2895_v52 }
  0xfc   : > { %2132 = vmatpush1.bf16.msra.mxu1 %v2929_v53 }
  0xfd   : > { %2133 = vmatprep.subr.bf16.mxu1 %v2937_v54 }
  0xfe   : > { %2093 = vmatpush1.bf16.msra.mxu0 %v2893_v55 }
  0xff   : > { %2094 = vmatprep.subr.bf16.mxu0 %v2898_v57 }
 0x100   : > { %2134 = vmatpush1.bf16.msra.mxu1 %v2935_v58 }
 0x101   : > { %2135 = vmatprep.subr.bf16.mxu1 %v2943_v59 }
 0x102   : > { %2095 = vmatpush1.bf16.msra.mxu0 %v2896_v60 }
 0x103   : > { %2096 = vmatprep.subr.bf16.mxu0 %v2904_v61 }
 0x104   : > { %2136 = vmatpush1.bf16.msra.mxu1 %v2941_v62 }
 0x106   : > { %2097 = vmatpush2.bf16.msra.mxu0 %v2902_v0 }
 0x107   : > { %2098 = vmatprep.subr.bf16.mxu0 %v2910_v1  ;;  %2154 = vmatmul.mubr.bf16.vlgmr.msra.gmra.mxu1 %v2947_v2 }
 0x10a   : > { %2099 = vmatpush2.bf16.msra.mxu0 %v2908_v3 }
 0x10b   : > { %2100 = vmatprep.subr.bf16.mxu0 %v2916_v4 }
 0x10e   : > { %2101 = vmatpush2.bf16.msra.mxu0 %v2914_v5 }
 0x10f   : > { %2102 = vmatprep.subr.bf16.mxu0 %v2922_v6 }
 0x112   : > { %2103 = vmatpush2.bf16.msra.mxu0 %v2920_v7 }
 0x113   : > { %2104 = vmatprep.subr.bf16.mxu0 %v2928_v8 }
 0x116   : > { %2105 = vmatpush2.bf16.msra.mxu0 %v2926_v9 }
 0x117   : > { %2106 = vmatprep.subr.bf16.mxu0 %v2934_v56 }
 0x11a   : > { %2107 = vmatpush2.bf16.msra.mxu0 %v2932_v11 }
 0x11b   : > { %2108 = vmatprep.subr.bf16.mxu0 %v2940_v13 }
 0x11e   : > { %2109 = vmatpush2.bf16.msra.mxu0 %v2938_v14 }
 0x11f   : > { %2110 = vmatprep.subr.bf16.mxu0 %v2946_v63 }
 0x122   : > { %2111 = vmatpush2.bf16.msra.mxu0 %v2944_v16 }
 0x125   : > { %v1868_v23 = vpop.f32.mrf.mxu0  ;;  %2113 = vmatmul.mubr.bf16.vlgmr.msra.gmra.mxu0 %v2274_v20 }
 0x126   : > { %v1869_v24 = vadd.f32 %v1868_v23, %v574_v21  ;;  %v1909_v26 = vpop.f32.mrf.mxu1 }
 0x127   : > { %v1870_v25 = vpop.f32.mrf.mxu0 }
 0x128   : > { %v1871_v27 = vadd.f32 %v1870_v25, %v578_v22  ;;  %v1910_v28 = vadd.f32 %v1909_v26, %v1869_v24  ;;  %v1911_v30 = vpop.f32.mrf.mxu1 }
 0x129   : > { %v1872_v29 = vpop.f32.mrf.mxu0 }
 0x12a   : > { %v1912_v31 = vadd.f32 %v1911_v30, %v1871_v27  ;;  %v1913_v33 = vpop.f32.mrf.mxu1 }
 0x12b   : > { %v1873_v32 = vpop.f32.mrf.mxu0 }
 0x12c   : > { %v1914_v34 = vpop.f32.mrf.mxu1 }
 0x165   : > { %v1950_v35 = vpop.f32.mrf.mxu0 }
 0x166   : > { %v1951_v36 = vadd.f32 %v1950_v35, %v1910_v28  ;;  %v1991_v10 = vpop.f32.mrf.mxu1 }
 0x167   : > { %v1952_v37 = vpop.f32.mrf.mxu0 }
 0x168   : > { %v1953_v38 = vadd.f32 %v1952_v37, %v1912_v31  ;;  %v1992_v39 = vadd.f32 %v1991_v10, %v1951_v36  ;;  %v1993_v41 = vpop.f32.mrf.mxu1 }
 0x169   : > { %v1954_v40 = vpop.f32.mrf.mxu0 }
 0x16a   : > { %v1994_v42 = vadd.f32 %v1993_v41, %v1953_v38  ;;  %v1995_v44 = vpop.f32.mrf.mxu1 }
 0x16b   : > { %v1955_v43 = vpop.f32.mrf.mxu0 }
 0x16c   : > { %v1996_v45 = vpop.f32.mrf.mxu1 }
 0x1a5   : > { %v2032_v46 = vpop.f32.mrf.mxu0 }
 0x1a6   : > { %v2033_v59 = vadd.f32 %v2032_v46, %v1992_v39 }
 0x1a7   : > { %v2034_v47 = vpop.f32.mrf.mxu0  ;;  %v2073_v48 = vpop.f32.mrf.mxu1 }
 0x1a8   : > { %v2035_v60 = vadd.f32 %v2034_v47, %v1994_v42  ;;  %v2074_v61 = vadd.f32 %v2073_v48, %v2033_v59 }
 0x1a9   : > { %v2036_v49 = vpop.f32.mrf.mxu0  ;;  %v2075_v50 = vpop.f32.mrf.mxu1 }
 0x1aa   : > { %v2076_v0 = vadd.f32 %v2075_v50, %v2035_v60 }
 0x1ab   : > { %v2037_v51 = vpop.f32.mrf.mxu0  ;;  %v2077_v52 = vpop.f32.mrf.mxu1 }
 0x1ad   : > { %v2078_v53 = vpop.f32.mrf.mxu1 }
 0x1c7   : > { %v2155_v54 = vpop.f32.mrf.mxu1 }
 0x1c9   : > { %v2157_v55 = vpop.f32.mrf.mxu1 }
 0x1cb   : > { %v2159_v57 = vpop.f32.mrf.mxu1 }
 0x1cd   : > { %v2160_v58 = vpop.f32.mrf.mxu1 }
 0x1e5   : > { %v2114_v62 = vpop.f32.mrf.mxu0 }
 0x1e6   : > { %v2115_v1 = vadd.f32 %v2114_v62, %v2074_v61 }
 0x1e7   : > { %v2116_v2 = vpop.f32.mrf.mxu0 }
 0x1e8   : > { %v2156_v3 = vadd.f32 %v2155_v54, %v2115_v1  ;;  %v2117_v4 = vadd.f32 %v2116_v2, %v2076_v0 }
 0x1e9   : > { %v2118_v5 = vpop.f32.mrf.mxu0 }
 0x1ea   : > { %2162 = vst [vmem:[%s178_s24] sm:$0xff] %v2156_v3  ;;  %v2158_v6 = vadd.f32 %v2157_v55, %v2117_v4 }
 0x1eb   : > { %v2119_v7 = vpop.f32.mrf.mxu0 }
 0x1ec   : > { %2163 = vst [vmem:[%s178_s24 + $0x8] sm:$0xff] %v2158_v6 }
 0x1ed   : > { %2987 = shalt.err (!%p2984_p0)
}
 0x1ee   : > { %s2988_s6 = scalar_lea.hbm %s3233_s28, 256  ;;  %s2992_s9 = scalar_lea.hbm %s3271_s3, 512 }
 0x1ef   : > { %p2989_p1 = scmp.ne.s32.totalorder %s3233_s28, %s2988_s6  ;;  %p2993_p4 = scmp.lt.s32.totalorder %s3233_s28, %s3271_s3 }
 0x1f0   : > { %p2994_p7 = scmp.lt.s32.totalorder %s2992_s9, %s2988_s6 }
 0x1f1   : > { %p2990_p2 = pnand %p2989_p1, %p3103_p5 }
 0x1f2   : > { %p2995_p6 = por %p2994_p7, %p2993_p4 }
 0x1f3   : > { %p2991_p3 = pneg %p2990_p2 }
 0x1f5   : > { %p2996_p8 = pnand %p2995_p6, %p2991_p3 }
 0x1f7   : > { %2999 = shalt.err (!%p2996_p8)
}
 0x1f8   : > { %2528 = dma.vmem_to_hbm [thread:$0]  (%p3103_p5), %s2180_s25, 256, %s3233_s28, %s2165_s29  }
 0x1f9 PF: > { %p2540_p9 = scmp.ge.s32.totalorder %s3038_s15, 2  ;;  %s2191_s17 = sand.u32 1, %s3026_s12  }
 0x1fa   : > { %p3283_p10 = scmp.ne.s32.totalorder %s3273_s23, 0  ;;  %s2192_s19 = scalar_lea.sflag [#allocation5], %s2191_s17 }
 0x1fc   : > { %p2535_p11 = pnand %p2540_p9, %p3283_p10 }
 0x1fe   : > { %p2536_p12 = pneg %p2535_p11 }
 0x200   : > { %3021 = dma.done.wait (%p2536_p12), %s2192_s19, 256  }
 0x201   : > { %3023 = vsyncadd (%p2536_p12), %s2192_s19, 4294967040  ;;  %p14_p13 = scmp.ge.s32.totalorder %s3090_s18, 4   ;;  %s3284_s12 = smov %s3030_s13 }
 0x202   : > { %s3285_s13 = smov %s3034_s14  ;;  %s3286_s14 = smov %s3101_s21 }
 0x203   : > { %s3287_s15 = smov %s3090_s18  ;;  %16 = sbr.rel (!%p14_p13) target bundleno = 4 (0x4), region = 72 }
 0x208   :  { %2197 = vsyncpa [#allocation4], 1 }
 0x209   :  { %2199 = vsyncpa [#allocation4 + $0x1], 1 }
 0x20a   :  { %2200 = vsyncpa [#allocation5], 1 }
 0x20b   :  { %2202 = vsyncpa [#allocation5 + $0x1], 1 }

</bundles_post_ra>
